<compile_context>
chip_gen: v5e
topology: v5e:2x2
jax: 0.10.0
libtpu: 0.0.40
codegen_flags: <defaults>
</compile_context>

<pallas_src>
import functools
import math

import jax
import jax.numpy as jnp
from jax.experimental import pallas as pl
from jax.experimental.pallas import tpu as pltpu


def _cdiv(a, b):
    return -(-a // b)


def _ae_kernel(n_layers, *refs):
    """refs = (x_ref, w0, b0, w1, b1, ..., w_{L-1}, b_{L-1}, out_ref).

    x_ref is the native-dtype input tile; w_i are bf16; b_i are f32 (1, out);
    out_ref is bf16 (or whatever out_dtype was requested).
    """
    x_ref = refs[0]
    out_ref = refs[-1]
    param_refs = refs[1:-1]

    # Cast the input tile to bf16 in-kernel (removes a separate HBM cast pass).
    h_lo = x_ref[...].astype(jnp.bfloat16)
    result = None
    for li in range(n_layers):
        w = param_refs[2 * li][...]                 # bf16 (in, out)
        b = param_refs[2 * li + 1][...]             # f32  (1, out) -> broadcast
        acc = jnp.dot(h_lo, w, preferred_element_type=jnp.float32) + b
        if li == n_layers - 1:
            # Sigmoid via EUP exp + approx reciprocal (both off the VALU slots).
            result = pl.reciprocal(1.0 + jnp.exp(-acc), approx=True)
        else:
            h_f32 = jnp.maximum(acc, 0.0)           # ReLU in f32
            h_lo = h_f32.astype(jnp.bfloat16)       # narrow only the MXU input
    out_ref[...] = result.astype(out_ref.dtype)


def _choose_tiles(B, batch_tile):
    """Return (TB, B_pad, n_steps).

    Small batches (<= 512 and <= batch_tile): one exact full block, no padding.
    Large batches: >= 2 grid steps (v7x dual-TC sharding), TB a multiple of 8
    chosen to minimise padding instead of rounding up to a fixed tile.
    """
    if B <= min(batch_tile, 512):
        return B, B, 1
    n = max(2, _cdiv(B, batch_tile))
    tb = _cdiv(_cdiv(B, n), 8) * 8
    n = _cdiv(B, tb)
    return tb, n * tb, n


def standard_ae_forward(x, params, *, batch_tile=512, out_dtype=jnp.bfloat16):
    """x: (B, C, H, W) or (B, D). params: list of (W(in,out), b(out,)) per layer."""
    B = x.shape[0]
    x_flat = jnp.reshape(x, (B, -1))                # preprocess(): flatten (view-like)
    D = x_flat.shape[1]
    in_itemsize = jnp.dtype(x_flat.dtype).itemsize
    out_itemsize = jnp.dtype(out_dtype).itemsize

    TB, B_pad, n_steps = _choose_tiles(B, batch_tile)
    if B_pad != B:
        # Minimal ragged-tail padding (only taken on the multi-step path).
        x_flat = jnp.pad(x_flat, ((0, B_pad - B), (0, 0)))

    flat_params = []
    in_specs = [pl.BlockSpec((TB, D), lambda i: (i, 0))]        # x tile (native dtype)
    param_bytes = 0
    flops = 0
    for w, b in params:
        w_bf16 = w.astype(jnp.bfloat16)
        b_f32 = b.reshape(1, -1).astype(jnp.float32)
        flat_params.append(w_bf16)
        flat_params.append(b_f32)
        # Constant index_map -> weights/biases stay VMEM-resident across the grid.
        in_specs.append(pl.BlockSpec(w_bf16.shape, lambda i: (0, 0)))
        in_specs.append(pl.BlockSpec(b_f32.shape, lambda i: (0, 0)))
        param_bytes += w_bf16.size * 2 + b_f32.size * 4
        flops += 2 * B_pad * w.shape[0] * w.shape[1]

    n_layers = len(params)
    out_dim = params[-1][0].shape[1]
    max_width = max(max(w.shape[1] for w, _ in params), D)
    kernel = functools.partial(_ae_kernel, n_layers)

    # VMEM budget: double-buffered x/out tiles + resident params + f32 activation
    # scratch headroom.  Raises v5e's 16 MiB scoped default when needed; capped
    # at v7x's 64 MiB physical VMEM.
    vmem_est = (2 * TB * D * in_itemsize
                + 2 * TB * out_dim * out_itemsize
                + param_bytes
                + 3 * TB * max_width * 4)
    vmem_limit = int(min(64 * 2**20, max(32 * 2**20, vmem_est * 1.25)))

    cost = pl.CostEstimate(
        flops=flops,
        transcendentals=B_pad * out_dim,            # exp in the final sigmoid
        bytes_accessed=B_pad * D * in_itemsize
                       + B_pad * out_dim * out_itemsize
                       + param_bytes,
    )

    out = pl.pallas_call(
        kernel,
        out_shape=jax.ShapeDtypeStruct((B_pad, out_dim), out_dtype),
        grid=(n_steps,),
        in_specs=in_specs,
        out_specs=pl.BlockSpec((TB, out_dim), lambda i: (i, 0)),
        compiler_params=pltpu.CompilerParams(
            dimension_semantics=("parallel",),      # v7x dual-TC; no-op on v5e/v6e
            vmem_limit_bytes=vmem_limit),
        cost_estimate=cost,
    )(x_flat, *flat_params)
    return out[:B] if B_pad != B else out


def init_standard_ae_params(key, input_dim, hidden_dims, latent_dim):
    """Deterministic init mimicking nn.Linear default: U(-1/sqrt(fan_in), 1/sqrt(fan_in))."""
    enc_dims = [input_dim] + list(hidden_dims) + [latent_dim]
    dec_dims = [latent_dim] + list(reversed(hidden_dims)) + [input_dim]
    layer_dims = list(zip(enc_dims[:-1], enc_dims[1:])) + \
                 list(zip(dec_dims[:-1], dec_dims[1:]))

    params = []
    for (d_in, d_out) in layer_dims:
        key, kw, kb = jax.random.split(key, 3)
        bound = 1.0 / math.sqrt(d_in)
        w = jax.random.uniform(kw, (d_in, d_out), jnp.float32, -bound, bound)
        b = jax.random.uniform(kb, (d_out,), jnp.float32, -bound, bound)
        params.append((w, b))
    return params


def _reference_forward(x, params):
    """Pure-JAX f32 reference of the same forward pass (correctness check)."""
    B = x.shape[0]
    h = jnp.reshape(x, (B, -1)).astype(jnp.float32)
    n_layers = len(params)
    for li, (w, b) in enumerate(params):
        h = h @ w + b
        h = jax.nn.sigmoid(h) if li == n_layers - 1 else jnp.maximum(h, 0.0)
    return h


if __name__ == "__main__":
    # Small shapes consistent with the module: image-like NCHW input flattened
    # by preprocess() into input_dim = C*H*W.
    B, C, H, W = 2, 4, 16, 16
    input_dim = C * H * W          # 1024
    hidden_dims = [128, 64]
    latent_dim = 32

    key = jax.random.PRNGKey(0)
    key, kx = jax.random.split(key)
    x = jax.random.normal(kx, (B, C, H, W), jnp.float32)

    params = init_standard_ae_params(key, input_dim, hidden_dims, latent_dim)

    out = standard_ae_forward(x, params)
    out = jax.block_until_ready(out)

    ref = _reference_forward(x, params)
    assert out.shape == (B, input_dim), out.shape
    # bf16 matmul operands + bf16 output (f32 accumulation) => loosened tolerance
    # vs the f32 reference.
    assert jnp.allclose(out.astype(jnp.float32), ref, atol=3e-2, rtol=3e-2), \
        "mismatch vs JAX reference"

    print("KERNEL_OK")
</pallas_src>

<mosaic_0001>
module attributes {stable_mosaic.version = 11 : i64} {
  func.func @_ae_kernel(%arg0: i32, %arg1: memref<2x1024xf32, #tpu.memory_space<vmem>>, %arg2: memref<1024x128xbf16, #tpu.memory_space<vmem>>, %arg3: memref<1x128xf32, #tpu.memory_space<vmem>>, %arg4: memref<128x64xbf16, #tpu.memory_space<vmem>>, %arg5: memref<1x64xf32, #tpu.memory_space<vmem>>, %arg6: memref<64x32xbf16, #tpu.memory_space<vmem>>, %arg7: memref<1x32xf32, #tpu.memory_space<vmem>>, %arg8: memref<32x64xbf16, #tpu.memory_space<vmem>>, %arg9: memref<1x64xf32, #tpu.memory_space<vmem>>, %arg10: memref<64x128xbf16, #tpu.memory_space<vmem>>, %arg11: memref<1x128xf32, #tpu.memory_space<vmem>>, %arg12: memref<128x1024xbf16, #tpu.memory_space<vmem>>, %arg13: memref<1x1024xf32, #tpu.memory_space<vmem>>, %arg14: memref<2x1024xbf16, #tpu.memory_space<vmem>>) attributes {dimension_semantics = [#tpu.dimension_semantics<parallel>], iteration_bounds = array<i64: 1>, scalar_prefetch = 0 : i64, scratch_operands = 0 : i64, tpu.core_type = #tpu.core_type<tc>, window_params = [{transform_indices = @transform_0, window_bounds = array<i64: 2, 1024>}, {pipeline_mode = #tpu.pipeline_mode<synchronous>, transform_indices = @transform_1, window_bounds = array<i64: 1024, 128>}, {pipeline_mode = #tpu.pipeline_mode<synchronous>, transform_indices = @transform_2, window_bounds = array<i64: 1, 128>}, {pipeline_mode = #tpu.pipeline_mode<synchronous>, transform_indices = @transform_3, window_bounds = array<i64: 128, 64>}, {pipeline_mode = #tpu.pipeline_mode<synchronous>, transform_indices = @transform_4, window_bounds = array<i64: 1, 64>}, {pipeline_mode = #tpu.pipeline_mode<synchronous>, transform_indices = @transform_5, window_bounds = array<i64: 64, 32>}, {pipeline_mode = #tpu.pipeline_mode<synchronous>, transform_indices = @transform_6, window_bounds = array<i64: 1, 32>}, {pipeline_mode = #tpu.pipeline_mode<synchronous>, transform_indices = @transform_7, window_bounds = array<i64: 32, 64>}, {pipeline_mode = #tpu.pipeline_mode<synchronous>, transform_indices = @transform_8, window_bounds = array<i64: 1, 64>}, {pipeline_mode = #tpu.pipeline_mode<synchronous>, transform_indices = @transform_9, window_bounds = array<i64: 64, 128>}, {pipeline_mode = #tpu.pipeline_mode<synchronous>, transform_indices = @transform_10, window_bounds = array<i64: 1, 128>}, {pipeline_mode = #tpu.pipeline_mode<synchronous>, transform_indices = @transform_11, window_bounds = array<i64: 128, 1024>}, {pipeline_mode = #tpu.pipeline_mode<synchronous>, transform_indices = @transform_12, window_bounds = array<i64: 1, 1024>}, {transform_indices = @transform_13, window_bounds = array<i64: 2, 1024>}]} {
    %c0 = arith.constant 0 : index
    %c0_0 = arith.constant 0 : index
    %0 = vector.load %arg1[%c0, %c0_0] : memref<2x1024xf32, #tpu.memory_space<vmem>>, vector<2x1024xf32>
    %1 = arith.truncf %0 : vector<2x1024xf32> to vector<2x1024xbf16>
    %c0_1 = arith.constant 0 : index
    %c0_2 = arith.constant 0 : index
    %2 = vector.load %arg2[%c0_1, %c0_2] : memref<1024x128xbf16, #tpu.memory_space<vmem>>, vector<1024x128xbf16>
    %c0_3 = arith.constant 0 : index
    %c0_4 = arith.constant 0 : index
    %3 = vector.load %arg3[%c0_3, %c0_4] : memref<1x128xf32, #tpu.memory_space<vmem>>, vector<1x128xf32>
    %cst = arith.constant dense<0.000000e+00> : vector<2x128xf32>
    %4 = tpu.matmul %1, %2, %cst {dimension_numbers = #tpu.dot_dimension_numbers<[1], [0], [0], [1], [0, 0, 1, 1], [], []>} : vector<2x1024xbf16>, vector<1024x128xbf16>, vector<2x128xf32> -> vector<2x128xf32>
    %5 = vector.broadcast %3 : vector<1x128xf32> to vector<2x128xf32>
    %6 = arith.addf %4, %5 : vector<2x128xf32>
    %cst_5 = arith.constant 0.000000e+00 : f32
    %7 = vector.broadcast %cst_5 : f32 to vector<2x128xf32>
    %8 = arith.maximumf %6, %7 : vector<2x128xf32>
    %9 = arith.truncf %8 : vector<2x128xf32> to vector<2x128xbf16>
    %c0_6 = arith.constant 0 : index
    %c0_7 = arith.constant 0 : index
    %10 = vector.load %arg4[%c0_6, %c0_7] : memref<128x64xbf16, #tpu.memory_space<vmem>>, vector<128x64xbf16>
    %c0_8 = arith.constant 0 : index
    %c0_9 = arith.constant 0 : index
    %11 = vector.load %arg5[%c0_8, %c0_9] : memref<1x64xf32, #tpu.memory_space<vmem>>, vector<1x64xf32>
    %cst_10 = arith.constant dense<0.000000e+00> : vector<2x64xf32>
    %12 = tpu.matmul %9, %10, %cst_10 {dimension_numbers = #tpu.dot_dimension_numbers<[1], [0], [0], [1], [0, 0, 1, 1], [], []>} : vector<2x128xbf16>, vector<128x64xbf16>, vector<2x64xf32> -> vector<2x64xf32>
    %13 = vector.broadcast %11 : vector<1x64xf32> to vector<2x64xf32>
    %14 = arith.addf %12, %13 : vector<2x64xf32>
    %cst_11 = arith.constant 0.000000e+00 : f32
    %15 = vector.broadcast %cst_11 : f32 to vector<2x64xf32>
    %16 = arith.maximumf %14, %15 : vector<2x64xf32>
    %17 = arith.truncf %16 : vector<2x64xf32> to vector<2x64xbf16>
    %c0_12 = arith.constant 0 : index
    %c0_13 = arith.constant 0 : index
    %18 = vector.load %arg6[%c0_12, %c0_13] : memref<64x32xbf16, #tpu.memory_space<vmem>>, vector<64x32xbf16>
    %c0_14 = arith.constant 0 : index
    %c0_15 = arith.constant 0 : index
    %19 = vector.load %arg7[%c0_14, %c0_15] : memref<1x32xf32, #tpu.memory_space<vmem>>, vector<1x32xf32>
    %cst_16 = arith.constant dense<0.000000e+00> : vector<2x32xf32>
    %20 = tpu.matmul %17, %18, %cst_16 {dimension_numbers = #tpu.dot_dimension_numbers<[1], [0], [0], [1], [0, 0, 1, 1], [], []>} : vector<2x64xbf16>, vector<64x32xbf16>, vector<2x32xf32> -> vector<2x32xf32>
    %21 = vector.broadcast %19 : vector<1x32xf32> to vector<2x32xf32>
    %22 = arith.addf %20, %21 : vector<2x32xf32>
    %cst_17 = arith.constant 0.000000e+00 : f32
    %23 = vector.broadcast %cst_17 : f32 to vector<2x32xf32>
    %24 = arith.maximumf %22, %23 : vector<2x32xf32>
    %25 = arith.truncf %24 : vector<2x32xf32> to vector<2x32xbf16>
    %c0_18 = arith.constant 0 : index
    %c0_19 = arith.constant 0 : index
    %26 = vector.load %arg8[%c0_18, %c0_19] : memref<32x64xbf16, #tpu.memory_space<vmem>>, vector<32x64xbf16>
    %c0_20 = arith.constant 0 : index
    %c0_21 = arith.constant 0 : index
    %27 = vector.load %arg9[%c0_20, %c0_21] : memref<1x64xf32, #tpu.memory_space<vmem>>, vector<1x64xf32>
    %cst_22 = arith.constant dense<0.000000e+00> : vector<2x64xf32>
    %28 = tpu.matmul %25, %26, %cst_22 {dimension_numbers = #tpu.dot_dimension_numbers<[1], [0], [0], [1], [0, 0, 1, 1], [], []>} : vector<2x32xbf16>, vector<32x64xbf16>, vector<2x64xf32> -> vector<2x64xf32>
    %29 = vector.broadcast %27 : vector<1x64xf32> to vector<2x64xf32>
    %30 = arith.addf %28, %29 : vector<2x64xf32>
    %cst_23 = arith.constant 0.000000e+00 : f32
    %31 = vector.broadcast %cst_23 : f32 to vector<2x64xf32>
    %32 = arith.maximumf %30, %31 : vector<2x64xf32>
    %33 = arith.truncf %32 : vector<2x64xf32> to vector<2x64xbf16>
    %c0_24 = arith.constant 0 : index
    %c0_25 = arith.constant 0 : index
    %34 = vector.load %arg10[%c0_24, %c0_25] : memref<64x128xbf16, #tpu.memory_space<vmem>>, vector<64x128xbf16>
    %c0_26 = arith.constant 0 : index
    %c0_27 = arith.constant 0 : index
    %35 = vector.load %arg11[%c0_26, %c0_27] : memref<1x128xf32, #tpu.memory_space<vmem>>, vector<1x128xf32>
    %cst_28 = arith.constant dense<0.000000e+00> : vector<2x128xf32>
    %36 = tpu.matmul %33, %34, %cst_28 {dimension_numbers = #tpu.dot_dimension_numbers<[1], [0], [0], [1], [0, 0, 1, 1], [], []>} : vector<2x64xbf16>, vector<64x128xbf16>, vector<2x128xf32> -> vector<2x128xf32>
    %37 = vector.broadcast %35 : vector<1x128xf32> to vector<2x128xf32>
    %38 = arith.addf %36, %37 : vector<2x128xf32>
    %cst_29 = arith.constant 0.000000e+00 : f32
    %39 = vector.broadcast %cst_29 : f32 to vector<2x128xf32>
    %40 = arith.maximumf %38, %39 : vector<2x128xf32>
    %41 = arith.truncf %40 : vector<2x128xf32> to vector<2x128xbf16>
    %c0_30 = arith.constant 0 : index
    %c0_31 = arith.constant 0 : index
    %42 = vector.load %arg12[%c0_30, %c0_31] : memref<128x1024xbf16, #tpu.memory_space<vmem>>, vector<128x1024xbf16>
    %c0_32 = arith.constant 0 : index
    %c0_33 = arith.constant 0 : index
    %43 = vector.load %arg13[%c0_32, %c0_33] : memref<1x1024xf32, #tpu.memory_space<vmem>>, vector<1x1024xf32>
    %cst_34 = arith.constant dense<0.000000e+00> : vector<2x1024xf32>
    %44 = tpu.matmul %41, %42, %cst_34 {dimension_numbers = #tpu.dot_dimension_numbers<[1], [0], [0], [1], [0, 0, 1, 1], [], []>} : vector<2x128xbf16>, vector<128x1024xbf16>, vector<2x1024xf32> -> vector<2x1024xf32>
    %45 = vector.broadcast %43 : vector<1x1024xf32> to vector<2x1024xf32>
    %46 = arith.addf %44, %45 : vector<2x1024xf32>
    %cst_35 = arith.constant 0.000000e+00 : f32
    %47 = vector.broadcast %cst_35 : f32 to vector<2x1024xf32>
    %48 = arith.subf %47, %46 : vector<2x1024xf32>
    %49 = math.exp %48 : vector<2x1024xf32>
    %cst_36 = arith.constant 1.000000e+00 : f32
    %50 = vector.broadcast %cst_36 : f32 to vector<2x1024xf32>
    %51 = arith.addf %50, %49 : vector<2x1024xf32>
    %52 = tpu.reciprocal %51 {approx = true} : vector<2x1024xf32> -> vector<2x1024xf32>
    %53 = arith.truncf %52 : vector<2x1024xf32> to vector<2x1024xbf16>
    %c0_37 = arith.constant 0 : index
    %c0_38 = arith.constant 0 : index
    %54 = vector.load %arg14[%c0_37, %c0_38] : memref<2x1024xbf16, #tpu.memory_space<vmem>>, vector<2x1024xbf16>
    tpu.vector_store %arg14[%c0_37, %c0_38], %53 {strides = array<i32>} : memref<2x1024xbf16, #tpu.memory_space<vmem>>, vector<2x1024xbf16>,
    return
  }
  func.func @transform_0(%arg0: i32) -> (i32, i32) {
    %c0_i32 = arith.constant 0 : i32
    %c0_i32_0 = arith.constant 0 : i32
    return %arg0, %c0_i32 : i32, i32
  }
  func.func @transform_1(%arg0: i32) -> (i32, i32) {
    %c0_i32 = arith.constant 0 : i32
    %c0_i32_0 = arith.constant 0 : i32
    %c0_i32_1 = arith.constant 0 : i32
    return %c0_i32, %c0_i32_0 : i32, i32
  }
  func.func @transform_2(%arg0: i32) -> (i32, i32) {
    %c0_i32 = arith.constant 0 : i32
    %c0_i32_0 = arith.constant 0 : i32
    %c0_i32_1 = arith.constant 0 : i32
    return %c0_i32, %c0_i32_0 : i32, i32
  }
  func.func @transform_3(%arg0: i32) -> (i32, i32) {
    %c0_i32 = arith.constant 0 : i32
    %c0_i32_0 = arith.constant 0 : i32
    %c0_i32_1 = arith.constant 0 : i32
    return %c0_i32, %c0_i32_0 : i32, i32
  }
  func.func @transform_4(%arg0: i32) -> (i32, i32) {
    %c0_i32 = arith.constant 0 : i32
    %c0_i32_0 = arith.constant 0 : i32
    %c0_i32_1 = arith.constant 0 : i32
    return %c0_i32, %c0_i32_0 : i32, i32
  }
  func.func @transform_5(%arg0: i32) -> (i32, i32) {
    %c0_i32 = arith.constant 0 : i32
    %c0_i32_0 = arith.constant 0 : i32
    %c0_i32_1 = arith.constant 0 : i32
    return %c0_i32, %c0_i32_0 : i32, i32
  }
  func.func @transform_6(%arg0: i32) -> (i32, i32) {
    %c0_i32 = arith.constant 0 : i32
    %c0_i32_0 = arith.constant 0 : i32
    %c0_i32_1 = arith.constant 0 : i32
    return %c0_i32, %c0_i32_0 : i32, i32
  }
  func.func @transform_7(%arg0: i32) -> (i32, i32) {
    %c0_i32 = arith.constant 0 : i32
    %c0_i32_0 = arith.constant 0 : i32
    %c0_i32_1 = arith.constant 0 : i32
    return %c0_i32, %c0_i32_0 : i32, i32
  }
  func.func @transform_8(%arg0: i32) -> (i32, i32) {
    %c0_i32 = arith.constant 0 : i32
    %c0_i32_0 = arith.constant 0 : i32
    %c0_i32_1 = arith.constant 0 : i32
    return %c0_i32, %c0_i32_0 : i32, i32
  }
  func.func @transform_9(%arg0: i32) -> (i32, i32) {
    %c0_i32 = arith.constant 0 : i32
    %c0_i32_0 = arith.constant 0 : i32
    %c0_i32_1 = arith.constant 0 : i32
    return %c0_i32, %c0_i32_0 : i32, i32
  }
  func.func @transform_10(%arg0: i32) -> (i32, i32) {
    %c0_i32 = arith.constant 0 : i32
    %c0_i32_0 = arith.constant 0 : i32
    %c0_i32_1 = arith.constant 0 : i32
    return %c0_i32, %c0_i32_0 : i32, i32
  }
  func.func @transform_11(%arg0: i32) -> (i32, i32) {
    %c0_i32 = arith.constant 0 : i32
    %c0_i32_0 = arith.constant 0 : i32
    %c0_i32_1 = arith.constant 0 : i32
    return %c0_i32, %c0_i32_0 : i32, i32
  }
  func.func @transform_12(%arg0: i32) -> (i32, i32) {
    %c0_i32 = arith.constant 0 : i32
    %c0_i32_0 = arith.constant 0 : i32
    %c0_i32_1 = arith.constant 0 : i32
    return %c0_i32, %c0_i32_0 : i32, i32
  }
  func.func @transform_13(%arg0: i32) -> (i32, i32) {
    %c0_i32 = arith.constant 0 : i32
    %c0_i32_0 = arith.constant 0 : i32
    return %arg0, %c0_i32 : i32, i32
  }
}

</mosaic_0001>

<bundles_post_ra>
// kernel: tpu_custom_call.1
= control target key start
LH: loop header
LB: loop body
LE: loop exit
PB: predicated region body
PF: predicated region fallthrough
CT: control target
= control target key end

     0   :  { %18 = vsyncpa [#allocation3], 0  ;;  %s2587_s0 = inlined_call_operand.vmem [shape: f32[2,1024], index: 0, kind: input, shape index: {}]   ;;  %s2588_s1 = inlined_call_operand.hbm [shape: bf16[1024,128], index: 1, kind: input, shape index: {}]   ;;  %s2589_s2 = inlined_call_operand.vmem [shape: f32[1,128], index: 2, kind: input, shape index: {}]   ;;  %s2590_s3 = inlined_call_operand.vmem [shape: bf16[128,64], index: 3, kind: input, shape index: {}]   ;;  %s2591_s4 = inlined_call_operand.vmem [shape: f32[1,64], index: 4, kind: input, shape index: {}]   ;;  %s2592_s5 = inlined_call_operand.vmem [shape: bf16[64,32], index: 5, kind: input, shape index: {}]   ;;  %s2593_s6 = inlined_call_operand.vmem [shape: f32[1,32], index: 6, kind: input, shape index: {}]   ;;  %s2594_s7 = inlined_call_operand.vmem [shape: bf16[32,64], index: 7, kind: input, shape index: {}]   ;;  %s2595_s8 = inlined_call_operand.vmem [shape: f32[1,64], index: 8, kind: input, shape index: {}]   ;;  %s2596_s9 = inlined_call_operand.vmem [shape: bf16[64,128], index: 9, kind: input, shape index: {}]   ;;  %s2597_s10 = inlined_call_operand.vmem [shape: f32[1,128], index: 10, kind: input, shape index: {}]   ;;  %s2598_s11 = inlined_call_operand.hbm [shape: bf16[128,1024], index: 11, kind: input, shape index: {}]   ;;  %s2599_s12 = inlined_call_operand.vmem [shape: f32[1,1024], index: 12, kind: input, shape index: {}]   ;;  %s2600_s13 = inlined_call_operand.hbm [shape: bf16[2,1024], index: 13, kind: output, shape index: {}]  }
   0x1   :  { %19 = vsyncpa [#allocation6], 0 }
   0x2   :  { %20 = vsyncpa [#allocation4], 0  ;;  %s27_s27 = sshll.u32 %s2588_s1, 4  ;;  %s2420_s28 = smov [#allocation2]   ;;  %s28_s27 = int_to_ptr.hbm [resolvable:$true] %s27_s27 }
   0x3   :  { %s29_s29 = sshll.u32 %s2420_s28, 4  ;;  %s58_s15 = sshll.u32 %s2598_s11, 4  ;;  %s30_s29 = int_to_ptr.vmem [resolvable:$true] %s29_s29  ;;  %s59_s15 = int_to_ptr.hbm [resolvable:$true] %s58_s15 }
   0x4   :  { %s2421_s16 = smov 64   ;;  %s2422_s17 = smov 4  }
   0x5   :  { %35 = dma.hbm_to_vmem [thread:$0]  %s28_s27, 8192, %s30_s29, [#allocation3], %s2421_s16, %s2421_s16, %s2422_s17  }
   0x6   :  { %s2423_s18 = smov [#allocation5]   ;;  %s2424_s20 = smov 512  }
   0x7   :  { %s60_s19 = sshll.u32 %s2423_s18, 4  ;;  %s2425_s21 = smov 32   ;;  %s61_s19 = int_to_ptr.vmem [resolvable:$true] %s60_s19 }
   0x8   :  { %66 = dma.hbm_to_vmem [thread:$0]  %s59_s15, 8192, %s61_s19, [#allocation6], %s2424_s20, %s2424_s20, %s2425_s21  }
   0x9   :  { %2414 = dma.done.wait [#allocation3], 8192  }
   0xa   :  { %2415 = vsyncadd [#allocation3], 4294959104 }
   0xb   :  { %2416 = dma.done.wait [#allocation6], 8192  }
   0xc   :  { %2417 = vsyncadd [#allocation6], 4294959104  ;;  %v2159_v0 = vld [vmem:[#allocation2 + $0x38] sm:$0xff]  ;;  %v2158_v4 = vld [vmem:[#allocation2 + $0x30] sm:$0xff]  ;;  %vm850_vm0 = vcmask 523264   ;;  %vm889_vm1 = vcmask 261120  }
   0xd   :  { %v2167_v1 = vld [vmem:[#allocation2 + $0x78] sm:$0xff]  ;;  %625 = vmatpush.bf16.msra.mxu0 %v2159_v0  ;;  %v2166_v5 = vld [vmem:[#allocation2 + $0x70] sm:$0xff]  ;;  %v2157_v8 = vld [vmem:[#allocation2 + $0x28] sm:$0xff]  ;;  %vm1523_vm2 = vcmask 1040384   ;;  %vm1527_vm3 = vcmask 1042434   ;;  %vm1531_vm4 = vcmask 1041408  }
   0xe   :  { %v2175_v2 = vld [vmem:[#allocation2 + $0xb8] sm:$0xff]  ;;  %638 = vmatpush.bf16.msra.mxu1 %v2167_v1  ;;  %v2174_v6 = vld [vmem:[#allocation2 + $0xb0] sm:$0xff]  ;;  %v2165_v9 = vld [vmem:[#allocation2 + $0x68] sm:$0xff]  ;;  %vm1533_vm5 = vcmask 1044484   ;;  %vm1537_vm6 = vcmask 1046534   ;;  %vm1541_vm7 = vcmask 1045508  }
   0xf   :  { %v2183_v3 = vld [vmem:[#allocation2 + $0xf8] sm:$0xff]  ;;  %651 = vmatpush.bf16.msra.mxu2 %v2175_v2  ;;  %v2182_v7 = vld [vmem:[#allocation2 + $0xf0] sm:$0xff]  ;;  %v2173_v10 = vld [vmem:[#allocation2 + $0xa8] sm:$0xff]  ;;  %vm1543_vm8 = vcmask 1043456  }
  0x10   :  { %664 = vmatpush.bf16.msra.mxu3 %v2183_v3  ;;  %v2181_v11 = vld [vmem:[#allocation2 + $0xe8] sm:$0xff]  ;;  %v2156_v12 = vld [vmem:[#allocation2 + $0x20] sm:$0xff]  ;;  %v78_v16 = vld [vmem:[%s2587_s0] sm:$0xff] }
  0x11   :  { %626 = vmatpush.bf16.msra.mxu0 %v2158_v4  ;;  %v2164_v13 = vld [vmem:[#allocation2 + $0x60] sm:$0xff]  ;;  %v2155_v17 = vld [vmem:[#allocation2 + $0x18] sm:$0xff]  ;;  %82 = vst [vmem:[#allocation1] ss:$4 sm:$0xff] %v78_v16  ;;  %v2154_v21 = vld [vmem:[#allocation2 + $0x10] sm:$0xff] }
  0x12   :  { %639 = vmatpush.bf16.msra.mxu1 %v2166_v5  ;;  %v2172_v14 = vld [vmem:[#allocation2 + $0xa0] sm:$0xff]  ;;  %v2163_v18 = vld [vmem:[#allocation2 + $0x58] sm:$0xff]  ;;  %v2162_v22 = vld [vmem:[#allocation2 + $0x50] sm:$0xff] }
  0x13   :  { %652 = vmatpush.bf16.msra.mxu2 %v2174_v6  ;;  %v2180_v15 = vld [vmem:[#allocation2 + $0xe0] sm:$0xff]  ;;  %v2171_v19 = vld [vmem:[#allocation2 + $0x98] sm:$0xff]  ;;  %v2170_v23 = vld [vmem:[#allocation2 + $0x90] sm:$0xff] }
  0x14   :  { %665 = vmatpush.bf16.msra.mxu3 %v2182_v7  ;;  %v2179_v20 = vld [vmem:[#allocation2 + $0xd8] sm:$0xff]  ;;  %v2178_v24 = vld [vmem:[#allocation2 + $0xd0] sm:$0xff]  ;;  %v2153_v25 = vld [vmem:[#allocation2 + $0x8] sm:$0xff] }
  0x15   :  { %627 = vmatpush.bf16.msra.mxu0 %v2157_v8  ;;  %v2161_v26 = vld [vmem:[#allocation2 + $0x48] sm:$0xff]  ;;  %v79_v29 = vld [vmem:[%s2587_s0 + $0x8] sm:$0xff]  ;;  %v2191_v34 = vld [vmem:[#allocation2 + $0x138] sm:$0xff] }
  0x16   :  { %640 = vmatpush.bf16.msra.mxu1 %v2165_v9  ;;  %v2169_v27 = vld [vmem:[#allocation2 + $0x88] sm:$0xff]  ;;  %v2152_v30 = vld [vmem:[#allocation2] sm:$0xff]  ;;  %84 = vst [vmem:[#allocation1 + $0x20] ss:$4 sm:$0xff] %v79_v29  ;;  %v2199_v35 = vld [vmem:[#allocation2 + $0x178] sm:$0xff] }
  0x17   :  { %653 = vmatpush.bf16.msra.mxu2 %v2173_v10  ;;  %v2177_v28 = vld [vmem:[#allocation2 + $0xc8] sm:$0xff]  ;;  %v2160_v31 = vld [vmem:[#allocation2 + $0x40] sm:$0xff]  ;;  %v2207_v40 = vld [vmem:[#allocation2 + $0x1b8] sm:$0xff] }
  0x18   :  { %666 = vmatpush.bf16.msra.mxu3 %v2181_v11  ;;  %v2168_v32 = vld [vmem:[#allocation2 + $0x80] sm:$0xff]  ;;  %v87_v36 = vld.sshfl [vmem:[#allocation1 + $0x10] sm:$0xff pattern:$0x73625140]  ;;  %v2215_v41 = vld [vmem:[#allocation2 + $0x1f8] sm:$0xff] }
  0x19   :  { %628 = vmatpush.bf16.msra.mxu0 %v2156_v12  ;;  %v2176_v33 = vld [vmem:[#allocation2 + $0xc0] sm:$0xff]  ;;  %v85_v37 = vld.sshfl [vmem:[#allocation1] sm:$0xff pattern:$0x73625140]  ;;  %v103_v42 = vpack.c.bf16 %v87_v36, %v87_v36  ;;  %v2190_v46 = vld [vmem:[#allocation2 + $0x130] sm:$0xff] }
  0x1a   :  { %641 = vmatpush.bf16.msra.mxu1 %v2164_v13  ;;  %v88_v38 = vld.sshfl [vmem:[#allocation1 + $0x18] sm:$0xff pattern:$0x73625140]  ;;  %v86_v39 = vld.sshfl [vmem:[#allocation1 + $0x8] sm:$0xff pattern:$0x73625140]  ;;  %v101_v43 = vpack.c.bf16 %v85_v37, %v85_v37 }
  0x1b   :  { %654 = vmatpush.bf16.msra.mxu2 %v2172_v14  ;;  %v104_v44 = vpack.c.bf16 %v88_v38, %v88_v38  ;;  %v102_v45 = vpack.c.bf16 %v86_v39, %v86_v39  ;;  %v2198_v47 = vld [vmem:[#allocation2 + $0x170] sm:$0xff]  ;;  %v2189_v50 = vld [vmem:[#allocation2 + $0x128] sm:$0xff]  ;;  %v2188_v54 = vld [vmem:[#allocation2 + $0x120] sm:$0xff] }
  0x1c   :  { %667 = vmatpush.bf16.msra.mxu3 %v2180_v15  ;;  %v2206_v48 = vld [vmem:[#allocation2 + $0x1b0] sm:$0xff]  ;;  %v2197_v51 = vld [vmem:[#allocation2 + $0x168] sm:$0xff]  ;;  %v2196_v55 = vld [vmem:[#allocation2 + $0x160] sm:$0xff] }
  0x1d   :  { %629 = vmatpush.bf16.msra.mxu0 %v2155_v17  ;;  %v2214_v49 = vld [vmem:[#allocation2 + $0x1f0] sm:$0xff]  ;;  %v2205_v52 = vld [vmem:[#allocation2 + $0x1a8] sm:$0xff]  ;;  %v2204_v56 = vld [vmem:[#allocation2 + $0x1a0] sm:$0xff] }
  0x1e   :  { %642 = vmatpush.bf16.msra.mxu1 %v2163_v18  ;;  %v2213_v53 = vld [vmem:[#allocation2 + $0x1e8] sm:$0xff]  ;;  %v2212_v57 = vld [vmem:[#allocation2 + $0x1e0] sm:$0xff]  ;;  %v2187_v58 = vld [vmem:[#allocation2 + $0x118] sm:$0xff] }
  0x1f   :  { %655 = vmatpush.bf16.msra.mxu2 %v2171_v19  ;;  %v2195_v59 = vld [vmem:[#allocation2 + $0x158] sm:$0xff]  ;;  %v2186_v62 = vld [vmem:[#allocation2 + $0x110] sm:$0xff]  ;;  %v2185_v2 = vld [vmem:[#allocation2 + $0x108] sm:$0xff] }
  0x20   :  { %668 = vmatpush.bf16.msra.mxu3 %v2179_v20  ;;  %v2203_v60 = vld [vmem:[#allocation2 + $0x198] sm:$0xff]  ;;  %v2194_v63 = vld [vmem:[#allocation2 + $0x150] sm:$0xff]  ;;  %v2193_v3 = vld [vmem:[#allocation2 + $0x148] sm:$0xff] }
  0x21   :  { %630 = vmatpush.bf16.msra.mxu0 %v2154_v21  ;;  %v2211_v61 = vld [vmem:[#allocation2 + $0x1d8] sm:$0xff]  ;;  %v2202_v0 = vld [vmem:[#allocation2 + $0x190] sm:$0xff]  ;;  %v2201_v4 = vld [vmem:[#allocation2 + $0x188] sm:$0xff] }
  0x22   :  { %643 = vmatpush.bf16.msra.mxu1 %v2162_v22  ;;  %v2210_v1 = vld [vmem:[#allocation2 + $0x1d0] sm:$0xff]  ;;  %v2209_v5 = vld [vmem:[#allocation2 + $0x1c8] sm:$0xff]  ;;  %v2184_v6 = vld [vmem:[#allocation2 + $0x100] sm:$0xff] }
  0x23   :  { %656 = vmatpush.bf16.msra.mxu2 %v2170_v23  ;;  %v2192_v7 = vld [vmem:[#allocation2 + $0x140] sm:$0xff]  ;;  %v89_v10 = vld.sshfl [vmem:[#allocation1 + $0x20] sm:$0xff pattern:$0x73625140]  ;;  %v2223_v18 = vld [vmem:[%s2590_s3 + $0x38] sm:$0xff] }
  0x24   :  { %669 = vmatpush.bf16.msra.mxu3 %v2178_v24  ;;  %v2200_v8 = vld [vmem:[#allocation2 + $0x180] sm:$0xff]  ;;  %v91_v12 = vld.sshfl [vmem:[#allocation1 + $0x30] sm:$0xff pattern:$0x73625140]  ;;  %v105_v14 = vpack.c.bf16 %v89_v10, %v89_v10  ;;  %v2220_v21 = vld [vmem:[%s2590_s3 + $0x20] sm:$0xff] }
  0x25   :  { %631 = vmatpush.bf16.msra.mxu0 %v2153_v25  ;;  %v2208_v9 = vld [vmem:[#allocation2 + $0x1c0] sm:$0xff]  ;;  %v92_v13 = vld.sshfl [vmem:[#allocation1 + $0x38] sm:$0xff pattern:$0x73625140]  ;;  %v107_v16 = vpack.c.bf16 %v91_v12, %v91_v12  ;;  %v2222_v19 = vld [vmem:[%s2590_s3 + $0x30] sm:$0xff] }
  0x26   :  { %644 = vmatpush.bf16.msra.mxu1 %v2161_v26  ;;  %v90_v11 = vld.sshfl [vmem:[#allocation1 + $0x28] sm:$0xff pattern:$0x73625140]  ;;  %v108_v17 = vpack.c.bf16 %v92_v13, %v92_v13  ;;  %v2219_v22 = vld [vmem:[%s2590_s3 + $0x18] sm:$0xff]  ;;  %v2218_v24 = vld [vmem:[%s2590_s3 + $0x10] sm:$0xff] }
  0x27   :  { %657 = vmatpush.bf16.msra.mxu2 %v2169_v27  ;;  %v106_v15 = vpack.c.bf16 %v90_v11, %v90_v11  ;;  %v2221_v20 = vld [vmem:[%s2590_s3 + $0x28] sm:$0xff]  ;;  %v2226_v36 = vld [vmem:[%s2592_s5 + $0x10] sm:$0xff]  ;;  %v2230_v10 = vld [vmem:[%s2596_s9] sm:$0xff] }
  0x28   :  { %670 = vmatpush.bf16.msra.mxu3 %v2177_v28  ;;  %v2217_v26 = vld [vmem:[%s2590_s3 + $0x8] sm:$0xff] }
  0x29   :  { %632 = vmatpush.bf16.msra.mxu0 %v2152_v30  ;;  %v2216_v30 = vld [vmem:[%s2590_s3] sm:$0xff]  ;;  %v2225_v38 = vld [vmem:[%s2592_s5 + $0x8] sm:$0xff]  ;;  %s1554_s3 = sshll.u32 %s2600_s13, 4  ;;  %s1555_s3 = int_to_ptr.hbm [resolvable:$true] %s1554_s3 }
  0x2a   :  { %645 = vmatpush.bf16.msra.mxu1 %v2160_v31  ;;  %v2122_v11 = vld [vmem:[#allocation5 + $0x1c0] sm:$0xf]  ;;  %v2290_v13 = vld [vmem:[#allocation5 + $0x1c4] sm:$0xf] }
  0x2b   :  { %658 = vmatpush.bf16.msra.mxu2 %v2168_v32  ;;  %v2305_v32 = vld [vmem:[%s2589_s2] ss:$0 sm:$0xff]  ;;  %v2294_v12 = vld [vmem:[#allocation5 + $0x1dc] sm:$0xf0] }
  0x2c   :  { %671 = vmatpush.bf16.msra.mxu3 %v2176_v33  ;;  %633 = vmatmul.bf16.vlgmr.msra.gmra.mxu0 %v101_v43  ;;  %v2227_v33 = vld [vmem:[%s2592_s5 + $0x18] sm:$0xff] }
  0x2d   :  { %677 = vmatpush.bf16.msrb.mxu0 %v2191_v34  ;;  %646 = vmatmul.bf16.vlgmr.msra.gmra.mxu1 %v102_v45 }
  0x2e   :  { %690 = vmatpush.bf16.msrb.mxu1 %v2199_v35  ;;  %659 = vmatmul.bf16.vlgmr.msra.gmra.mxu2 %v103_v42 }
  0x2f   :  { %703 = vmatpush.bf16.msrb.mxu2 %v2207_v40  ;;  %672 = vmatmul.bf16.vlgmr.msra.gmra.mxu3 %v104_v44 }
  0x30   :  { %716 = vmatpush.bf16.msrb.mxu3 %v2215_v41 }
  0x31   :  { %678 = vmatpush.bf16.msrb.mxu0 %v2190_v46 }
  0x32   :  { %691 = vmatpush.bf16.msrb.mxu1 %v2198_v47 }
  0x33   :  { %704 = vmatpush.bf16.msrb.mxu2 %v2206_v48 }
  0x34   :  { %717 = vmatpush.bf16.msrb.mxu3 %v2214_v49 }
  0x35   :  { %679 = vmatpush.bf16.msrb.mxu0 %v2189_v50 }
  0x36   :  { %692 = vmatpush.bf16.msrb.mxu1 %v2197_v51 }
  0x37   :  { %705 = vmatpush.bf16.msrb.mxu2 %v2205_v52 }
  0x38   :  { %718 = vmatpush.bf16.msrb.mxu3 %v2213_v53 }
  0x39   :  { %680 = vmatpush.bf16.msrb.mxu0 %v2188_v54 }
  0x3a   :  { %693 = vmatpush.bf16.msrb.mxu1 %v2196_v55 }
  0x3b   :  { %706 = vmatpush.bf16.msrb.mxu2 %v2204_v56  ;;  %v2224_v56 = vld [vmem:[%s2592_s5] sm:$0xff] }
  0x3c   :  { %719 = vmatpush.bf16.msrb.mxu3 %v2212_v57  ;;  %v2229_v57 = vld [vmem:[%s2594_s7 + $0x8] sm:$0xff] }
  0x3d   :  { %681 = vmatpush.bf16.msrb.mxu0 %v2187_v58  ;;  %v2228_v58 = vld [vmem:[%s2594_s7] sm:$0xff] }
  0x3e   :  { %694 = vmatpush.bf16.msrb.mxu1 %v2195_v59  ;;  %v2306_v59 = vld [vmem:[%s2591_s4] ss:$0 sm:$0xff] }
  0x3f   :  { %707 = vmatpush.bf16.msrb.mxu2 %v2203_v60 }
  0x40   :  { %720 = vmatpush.bf16.msrb.mxu3 %v2211_v61 }
  0x41   :  { %682 = vmatpush.bf16.msrb.mxu0 %v2186_v62 }
  0x42   :  { %695 = vmatpush.bf16.msrb.mxu1 %v2194_v63 }
  0x43   :  { %708 = vmatpush.bf16.msrb.mxu2 %v2202_v0 }
  0x44   :  { %721 = vmatpush.bf16.msrb.mxu3 %v2210_v1  ;;  %v2233_v1 = vld [vmem:[%s2596_s9 + $0x18] sm:$0xff] }
  0x45   :  { %683 = vmatpush.bf16.msrb.mxu0 %v2185_v2  ;;  %v2232_v2 = vld [vmem:[%s2596_s9 + $0x10] sm:$0xff] }
  0x46   :  { %696 = vmatpush.bf16.msrb.mxu1 %v2193_v3  ;;  %v2231_v3 = vld [vmem:[%s2596_s9 + $0x8] sm:$0xff] }
  0x47   :  { %709 = vmatpush.bf16.msrb.mxu2 %v2201_v4  ;;  %v2307_v4 = vld [vmem:[%s2593_s6] ss:$0 sm:$0xff] }
  0x48   :  { %722 = vmatpush.bf16.msrb.mxu3 %v2209_v5 }
  0x49   :  { %684 = vmatpush.bf16.msrb.mxu0 %v2184_v6 }
  0x4a   :  { %697 = vmatpush.bf16.msrb.mxu1 %v2192_v7 }
  0x4b   :  { %710 = vmatpush.bf16.msrb.mxu2 %v2200_v8 }
  0x4c   :  { %723 = vmatpush.bf16.msrb.mxu3 %v2208_v9  ;;  %685 = vmatmul.bf16.vlgmr.msrb.gmra.mxu0 %v105_v14  ;;  %v2123_v14 = vor.u32 %v2294_v12, %v2122_v11  ;;  %v1970_v11 = vld [vmem:[#allocation5 + $0x88] sm:$0xf] }
  0x4d   :  { %698 = vmatmul.bf16.vlgmr.msrb.gmra.mxu1 %v106_v15  ;;  %799 = vmatpush.bf16.msra.mxu0 %v2223_v18  ;;  %v2124_v15 = vld [vmem:[#allocation5 + $0x1e0] sm:$0xf0]  ;;  %v2255_v12 = vld [vmem:[#allocation5 + $0xa4] sm:$0xf0] }
  0x4e   :  { %711 = vmatmul.bf16.vlgmr.msrb.gmra.mxu2 %v107_v16  ;;  %858 = vmatpush.bf16.msra.mxu1 %v2227_v33  ;;  %v2130_v16 = vld [vmem:[#allocation5 + $0x1c8] sm:$0xf]  ;;  %v2127_v18 = vor.u32 %v2290_v13, %v2124_v15  ;;  %v2100_v33 = vld [vmem:[#allocation5 + $0x1a8] sm:$0xf0]  ;;  %v2308_v15 = vld [vmem:[%s2595_s8] ss:$0 sm:$0xff] }
  0x4f   :  { %724 = vmatmul.bf16.vlgmr.msrb.gmra.mxu3 %v108_v17  ;;  %899 = vmatpush.bf16.msra.mxu2 %v2229_v57  ;;  %v2295_v17 = vld [vmem:[#allocation5 + $0x1e4] sm:$0xf0]  ;;  %v2251_v13 = vld [vmem:[#allocation5 + $0x8c] sm:$0xf] }
  0x50   :  { %951 = vmatpush.bf16.msra.mxu3 %v2233_v1  ;;  %v2259_v1 = vld [vmem:[#allocation5 + $0xcc] sm:$0xf] }
  0x51   :  { %800 = vmatpush.bf16.msra.mxu0 %v2222_v19  ;;  %v2131_v19 = vor.u32 %v2295_v17, %v2130_v16 }
  0x52   :  { %859 = vmatpush.bf16.msra.mxu1 %v2226_v36 }
  0x53   :  { %900 = vmatpush.bf16.msra.mxu2 %v2228_v58  ;;  %v1994_v58 = vld [vmem:[#allocation5 + $0xc0] sm:$0xf] }
  0x54   :  { %952 = vmatpush.bf16.msra.mxu3 %v2232_v2  ;;  %v2004_v2 = vld [vmem:[#allocation5 + $0xe8] sm:$0xf0] }
  0x55   :  { %801 = vmatpush.bf16.msra.mxu0 %v2221_v20  ;;  %v2291_v20 = vld [vmem:[#allocation5 + $0x1cc] sm:$0xf] }
  0x56   :  { %860 = vmatpush.bf16.msra.mxu1 %v2225_v38  ;;  %v2060_v38 = vld [vmem:[#allocation5 + $0x160] sm:$0xf0] }
  0x57   :  { %1377 = vmatpush.bf16.msrb.mxu2 %v2127_v18  ;;  %v1971_v18 = vor.u32 %v2255_v12, %v1970_v11  ;;  %v2276_v11 = vld [vmem:[#allocation5 + $0x154] sm:$0xf] }
  0x58   :  { %953 = vmatpush.bf16.msra.mxu3 %v2231_v3 }
  0x59   :  { %802 = vmatpush.bf16.msra.mxu0 %v2220_v21  ;;  %v2132_v21 = vld [vmem:[#allocation5 + $0x1e8] sm:$0xf0] }
  0x5a   :  { %861 = vmatpush.bf16.msra.mxu1 %v2224_v56 }
  0x5c   :  { %954 = vmatpush.bf16.msra.mxu3 %v2230_v10  ;;  %v1964_v10 = vld [vmem:[#allocation5 + $0xa0] sm:$0xf0] }
  0x5d   :  { %803 = vmatpush.bf16.msra.mxu0 %v2219_v22  ;;  %v2090_v22 = vld [vmem:[#allocation5 + $0x180] sm:$0xf] }
  0x5e   :  { %1364 = vmatpush.bf16.msrb.mxu1 %v2123_v14  ;;  %v1972_v14 = vld [vmem:[#allocation5 + $0xa8] sm:$0xf0] }
  0x60   :  { %1390 = vmatpush.bf16.msrb.mxu3 %v2131_v19  ;;  %v1930_v19 = vld [vmem:[#allocation5 + $0x40] sm:$0xf] }
  0x61   :  { %804 = vmatpush.bf16.msra.mxu0 %v2218_v24  ;;  %v2286_v24 = vld [vmem:[#allocation5 + $0x19c] sm:$0xf0] }
  0x65   :  { %805 = vmatpush.bf16.msra.mxu0 %v2217_v26  ;;  %v2092_v26 = vld [vmem:[#allocation5 + $0x1a0] sm:$0xf0] }
  0x69   :  { %806 = vmatpush.bf16.msra.mxu0 %v2216_v30  ;;  %v2287_v30 = vld [vmem:[#allocation5 + $0x1a4] sm:$0xf0] }
  0xa9   :  { %v634_v23 = vpop.f32.mrf.mxu0 }
  0xaa   :  { %v647_v25 = vpop.f32.mrf.mxu1  ;;  %v635_v37 = vadd.f32 %v2305_v32, %v634_v23  ;;  %v2135_v23 = vor.u32 %v2291_v20, %v2132_v21  ;;  %v2246_v20 = vld [vmem:[#allocation5 + $0x5c] sm:$0xf0]  ;;  %v2242_v21 = vld [vmem:[#allocation5 + $0x44] sm:$0xf] }
  0xac   :  { %v648_v39 = vadd.f32 %v647_v25, %v635_v37  ;;  %v2282_v25 = vld [vmem:[#allocation5 + $0x184] sm:$0xf]  ;;  %1403 = vmatpush.bf16.msrb.mxu0 %v2135_v23 }
  0xad   :  { %v2274_v37 = vld [vmem:[#allocation5 + $0x144] sm:$0xf] }
  0xae   :  { %v1932_v23 = vld [vmem:[#allocation5 + $0x60] sm:$0xf0] }
  0xb1   :  { %v660_v27 = vpop.f32.mrf.mxu2  ;;  %v636_v29 = vpop.f32.mrf.mxu0 }
  0xb2   :  { %v673_v28 = vpop.f32.mrf.mxu3  ;;  %v649_v31 = vpop.f32.mrf.mxu1  ;;  %v661_v40 = vadd.f32 %v660_v27, %v648_v39  ;;  %v2091_v27 = vor.u32 %v2286_v24, %v2090_v22  ;;  %v2098_v29 = vld [vmem:[#allocation5 + $0x188] sm:$0xf]  ;;  %v1975_v22 = vor.u32 %v2251_v13, %v1972_v14  ;;  %v2076_v13 = vld [vmem:[#allocation5 + $0x170] sm:$0xf0]  ;;  %v2082_v14 = vld [vmem:[#allocation5 + $0x158] sm:$0xf] }
  0xb3   :  { %v2283_v31 = vld [vmem:[#allocation5 + $0x18c] sm:$0xf]  ;;  %v2099_v32 = vor.u32 %v2287_v30, %v2098_v29  ;;  %v2066_v39 = vld [vmem:[#allocation5 + $0x148] sm:$0xf]  ;;  %v1898_v29 = vld [vmem:[#allocation5] sm:$0xf] }
  0xb4   :  { %v674_v41 = vadd.f32 %v673_v28, %v661_v40  ;;  %v2095_v28 = vor.u32 %v2282_v25, %v2092_v26  ;;  %v2103_v36 = vor.u32 %v2283_v31, %v2100_v33  ;;  %1365 = vmatpush.bf16.msrb.mxu1 %v2091_v27  ;;  %v1938_v24 = vld [vmem:[#allocation5 + $0x48] sm:$0xf]  ;;  %v2243_v26 = vld [vmem:[#allocation5 + $0x4c] sm:$0xf]  ;;  %v2238_v30 = vld [vmem:[#allocation5 + $0x1c] sm:$0xf0]  ;;  %v1935_v33 = vor.u32 %v2242_v21, %v1932_v23 }
  0xb5   :  { %1391 = vmatpush.bf16.msrb.mxu3 %v2099_v32  ;;  %v2247_v25 = vld [vmem:[#allocation5 + $0x64] sm:$0xf0]  ;;  %v1940_v27 = vld [vmem:[#allocation5 + $0x68] sm:$0xf0]  ;;  %v2234_v31 = vld [vmem:[#allocation5 + $0x4] sm:$0xf] }
  0xb6   :  { %1378 = vmatpush.bf16.msrb.mxu2 %v2095_v28  ;;  %1404 = vmatpush.bf16.msrb.mxu0 %v2103_v36  ;;  %v1931_v28 = vor.u32 %v2246_v20, %v1930_v19  ;;  %v1906_v36 = vld [vmem:[#allocation5 + $0x8] sm:$0xf]  ;;  %v2084_v19 = vld [vmem:[#allocation5 + $0x178] sm:$0xf0]  ;;  %v2042_v21 = vld [vmem:[#allocation5 + $0x110] sm:$0xf] }
  0xb7   :  { %v2268_v23 = vld [vmem:[#allocation5 + $0x114] sm:$0xf] }
  0xb9   :  { %v662_v34 = vpop.f32.mrf.mxu2 }
  0xba   :  { %v675_v35 = vpop.f32.mrf.mxu3  ;;  %v2058_v34 = vld [vmem:[#allocation5 + $0x140] sm:$0xf] }
  0xbb   :  { %v2278_v35 = vld [vmem:[#allocation5 + $0x15c] sm:$0xf0] }
  0xbc   :  { %v2059_v40 = vor.u32 %v2278_v35, %v2058_v34  ;;  %v1939_v34 = vor.u32 %v2247_v25, %v1938_v24  ;;  %v1900_v35 = vld [vmem:[#allocation5 + $0x20] sm:$0xf0]  ;;  %v2044_v25 = vld [vmem:[#allocation5 + $0x130] sm:$0xf0] }
  0xbe   :  { %1366 = vmatpush.bf16.msrb.mxu1 %v2059_v40  ;;  %v2235_v40 = vld [vmem:[#allocation5 + $0xc] sm:$0xf] }
  0xc9   :  { %v686_v42 = vpop.f32.mrf.mxu0 }
  0xca   :  { %v699_v43 = vpop.f32.mrf.mxu1  ;;  %v687_v44 = vadd.f32 %v686_v42, %v674_v41  ;;  %v2279_v41 = vld [vmem:[#allocation5 + $0x164] sm:$0xf0]  ;;  %v2275_v42 = vld [vmem:[#allocation5 + $0x14c] sm:$0xf] }
  0xcc   :  { %v700_v45 = vadd.f32 %v699_v43, %v687_v44  ;;  %v2068_v43 = vld [vmem:[#allocation5 + $0x168] sm:$0xf0]  ;;  %v2063_v44 = vor.u32 %v2274_v37, %v2060_v38  ;;  %v2239_v37 = vld [vmem:[#allocation5 + $0x24] sm:$0xf0] }
  0xce   :  { %1379 = vmatpush.bf16.msrb.mxu2 %v2063_v44  ;;  %v2292_v44 = vld [vmem:[#allocation5 + $0x1d4] sm:$0xf] }
  0xd1   :  { %v712_v46 = vpop.f32.mrf.mxu2  ;;  %v688_v49 = vpop.f32.mrf.mxu0 }
  0xd2   :  { %v725_v47 = vpop.f32.mrf.mxu3  ;;  %v713_v48 = vadd.f32 %v712_v46, %v700_v45  ;;  %v701_v50 = vpop.f32.mrf.mxu1  ;;  %v2067_v45 = vor.u32 %v2279_v41, %v2066_v39  ;;  %v2026_v46 = vld [vmem:[#allocation5 + $0x100] sm:$0xf]  ;;  %v2071_v49 = vor.u32 %v2275_v42, %v2068_v43  ;;  %v1943_v39 = vor.u32 %v2243_v26, %v1940_v27  ;;  %v1908_v41 = vld [vmem:[#allocation5 + $0x28] sm:$0xf0]  ;;  %v2138_v42 = vld [vmem:[#allocation5 + $0x1d0] sm:$0xf] }
  0xd3   :  { %v2028_v50 = vld [vmem:[#allocation5 + $0x120] sm:$0xf0]  ;;  %v2296_v43 = vld [vmem:[#allocation5 + $0x1ec] sm:$0xf0]  ;;  %v2050_v26 = vld [vmem:[#allocation5 + $0x118] sm:$0xf] }
  0xd4   :  { %v726_v51 = vadd.f32 %v725_v47, %v713_v48  ;;  %v2270_v47 = vld [vmem:[#allocation5 + $0x11c] sm:$0xf0]  ;;  %v2266_v48 = vld [vmem:[#allocation5 + $0x104] sm:$0xf]  ;;  %1392 = vmatpush.bf16.msrb.mxu3 %v2067_v45  ;;  %1405 = vmatpush.bf16.msrb.mxu0 %v2071_v49  ;;  %v2140_v45 = vld [vmem:[#allocation5 + $0x1f0] sm:$0xf0] }
  0xd5   :  { %v2031_v56 = vor.u32 %v2266_v48, %v2028_v50  ;;  %v2146_v48 = vld [vmem:[#allocation5 + $0x1d8] sm:$0xf]  ;;  %v1903_v50 = vor.u32 %v2234_v31, %v1900_v35  ;;  %v2052_v31 = vld [vmem:[#allocation5 + $0x138] sm:$0xf0]  ;;  %v2260_v35 = vld [vmem:[#allocation5 + $0xd4] sm:$0xf] }
  0xd6   :  { %v729_v52 = vmax.f32 %v726_v51, 0.0  ;;  %v2034_v51 = vld [vmem:[#allocation5 + $0x108] sm:$0xf]  ;;  %v2297_v49 = vld [vmem:[#allocation5 + $0x1f4] sm:$0xf0] }
  0xd7   :  { %1380 = vmatpush.bf16.msrb.mxu2 %v2031_v56  ;;  %v2139_v56 = vor.u32 %v2296_v43, %v2138_v42  ;;  %v2273_v27 = vld [vmem:[#allocation5 + $0x134] sm:$0xf0]  ;;  %v2261_v42 = vld [vmem:[#allocation5 + $0xdc] sm:$0xf] }
  0xd8   :  { %v730_v53 = vpack.c.bf16 %v729_v52, %v729_v52  ;;  %v2271_v52 = vld [vmem:[#allocation5 + $0x124] sm:$0xf0]  ;;  %v2020_v43 = vld [vmem:[#allocation5 + $0xf8] sm:$0xf0] }
  0xd9   :  { %v714_v54 = vpop.f32.mrf.mxu2  ;;  %v2035_v57 = vor.u32 %v2271_v52, %v2034_v51  ;;  %v1907_v51 = vor.u32 %v2239_v37, %v1906_v36  ;;  %v2293_v52 = vld [vmem:[#allocation5 + $0x1dc] sm:$0xf]  ;;  %v2012_v37 = vld [vmem:[#allocation5 + $0xf0] sm:$0xf0] }
  0xda   :  { %v727_v55 = vpop.f32.mrf.mxu3  ;;  %807 = vmatmul.bf16.vlgmr.msra.gmra.mxu0 %v730_v53  ;;  %v2267_v53 = vld [vmem:[#allocation5 + $0x10c] sm:$0xf] }
  0xdb   :  { %v2036_v54 = vld [vmem:[#allocation5 + $0x128] sm:$0xf0]  ;;  %v2027_v55 = vor.u32 %v2270_v47, %v2026_v46  ;;  %1393 = vmatpush.bf16.msrb.mxu3 %v2035_v57  ;;  %v1899_v47 = vor.u32 %v2238_v30, %v1898_v29  ;;  %v2143_v57 = vor.u32 %v2292_v44, %v2140_v45  ;;  %v2051_v29 = vor.u32 %v2273_v27, %v2050_v26  ;;  %v2269_v30 = vld [vmem:[#allocation5 + $0x11c] sm:$0xf]  ;;  %v1978_v44 = vld [vmem:[#allocation5 + $0x90] sm:$0xf] }
  0xdc   :  { %v2023_v45 = vor.u32 %v2261_v42, %v2020_v43 }
  0xdd   :  { %1367 = vmatpush.bf16.msrb.mxu1 %v2027_v55  ;;  %v1911_v55 = vor.u32 %v2235_v40, %v1908_v41  ;;  %v2015_v40 = vor.u32 %v2260_v35, %v2012_v37 }
 0x157   :  { %v808_v60 = vpop.f32.mrf.mxu0 }
 0x158   :  { %v809_v61 = vadd.f32 %v2306_v59, %v808_v60  ;;  %v2262_v59 = vld [vmem:[#allocation5 + $0xdc] sm:$0xf0]  ;;  %v2258_v60 = vld [vmem:[#allocation5 + $0xc4] sm:$0xf] }
 0x159   :  { %v1995_v3 = vor.u32 %v2262_v59, %v1994_v58  ;;  %v2147_v58 = vor.u32 %v2297_v49, %v2146_v48  ;;  %v2106_v59 = vld [vmem:[#allocation5 + $0x190] sm:$0xf]  ;;  %v1980_v48 = vld [vmem:[#allocation5 + $0xb0] sm:$0xf0] }
 0x15a   :  { %v812_v62 = vmax.f32 %v809_v61, 0.0  ;;  %v2039_v61 = vor.u32 %v2267_v53, %v2036_v54  ;;  %v2148_v53 = vld [vmem:[#allocation5 + $0x1f8] sm:$0xf0] }
 0x15b   :  { %1368 = vmatpush.bf16.msrb.mxu1 %v1995_v3  ;;  %v2285_v3 = vld [vmem:[#allocation5 + $0x19c] sm:$0xf] }
 0x15c   :  { %v813_v63 = vpack.c.bf16 %v812_v62, %v812_v62  ;;  %v1996_v62 = vld [vmem:[#allocation5 + $0xe0] sm:$0xf0]  ;;  %1406 = vmatpush.bf16.msrb.mxu0 %v2039_v61  ;;  %v2284_v61 = vld [vmem:[#allocation5 + $0x194] sm:$0xf] }
 0x15e   :  { %1869 = vmatmul.msk.bf16.vlgmr.msra.gmra.mxu1 %vm850_vm0, %v813_v63  ;;  %v2002_v63 = vld [vmem:[#allocation5 + $0xc8] sm:$0xf] }
 0x15f   :  { %v810_v0 = vpop.f32.mrf.mxu0 }
 0x160   :  { %v2263_v0 = vld [vmem:[#allocation5 + $0xe4] sm:$0xf0] }
 0x1db   :  { %v863_v5 = vpop.f32.mrf.mxu1 }
 0x1dc   :  { %v864_v6 = vadd.f32 %v2307_v4, %v863_v5  ;;  %v1999_v4 = vor.u32 %v2258_v60, %v1996_v62  ;;  %v2003_v5 = vor.u32 %v2263_v0, %v2002_v63  ;;  %v2288_v60 = vld [vmem:[#allocation5 + $0x1ac] sm:$0xf0]  ;;  %v2151_v62 = vor.u32 %v2293_v52, %v2148_v53  ;;  %v2108_v63 = vld [vmem:[#allocation5 + $0x1b0] sm:$0xf0]  ;;  %v2114_v0 = vld [vmem:[#allocation5 + $0x198] sm:$0xf] }
 0x1dd   :  { %v2257_v52 = vld [vmem:[#allocation5 + $0xb4] sm:$0xf0]  ;;  %v2253_v53 = vld [vmem:[#allocation5 + $0x9c] sm:$0xf] }
 0x1de   :  { %v867_v7 = vmax.f32 %v864_v6, 0.0  ;;  %v1962_v6 = vld [vmem:[#allocation5 + $0x80] sm:$0xf]  ;;  %1381 = vmatpush.bf16.msrb.mxu2 %v1999_v4  ;;  %1394 = vmatpush.bf16.msrb.mxu3 %v2003_v5  ;;  %v2116_v4 = vld [vmem:[#allocation5 + $0x1b8] sm:$0xf0]  ;;  %v2107_v5 = vor.u32 %v2288_v60, %v2106_v59 }
 0x1df   :  { %v2244_v59 = vld [vmem:[#allocation5 + $0x54] sm:$0xf] }
 0x1e0   :  { %v868_v8 = vpack.c.bf16 %v867_v7, %v867_v7  ;;  %v2254_v7 = vld [vmem:[#allocation5 + $0x9c] sm:$0xf0]  ;;  %v1948_v60 = vld [vmem:[#allocation5 + $0x70] sm:$0xf0] }
 0x1e1   :  { %v1963_v16 = vor.u32 %v2254_v7, %v1962_v6  ;;  %v2111_v6 = vor.u32 %v2284_v61, %v2108_v63  ;;  %v1954_v61 = vld [vmem:[#allocation5 + $0x58] sm:$0xf] }
 0x1e2   :  { %1878 = vmatmul.msk.bf16.vlgmr.msra.gmra.mxu2 %vm889_vm1, %v868_v8  ;;  %v2250_v8 = vld [vmem:[#allocation5 + $0x84] sm:$0xf]  ;;  %1395 = vmatpush.bf16.msrb.mxu3 %v1971_v18  ;;  %v2277_v18 = vld [vmem:[#allocation5 + $0x15c] sm:$0xf]  ;;  %v2249_v63 = vld [vmem:[#allocation5 + $0x74] sm:$0xf0] }
 0x1e3   :  { %v865_v9 = vpop.f32.mrf.mxu1  ;;  %v1967_v17 = vor.u32 %v2250_v8, %v1964_v10  ;;  %1369 = vmatpush.bf16.msrb.mxu1 %v1963_v16  ;;  %v2119_v8 = vor.u32 %v2285_v3, %v2116_v4  ;;  %v2280_v10 = vld [vmem:[#allocation5 + $0x16c] sm:$0xf0]  ;;  %v2079_v16 = vor.u32 %v2276_v11, %v2076_v13  ;;  %v2087_v20 = vor.u32 %v2277_v18, %v2084_v19  ;;  %v2237_v11 = vld [vmem:[#allocation5 + $0x1c] sm:$0xf] }
 0x1e4   :  { %v2007_v9 = vor.u32 %v2259_v1, %v2004_v2  ;;  %v2289_v1 = vld [vmem:[#allocation5 + $0x1b4] sm:$0xf0]  ;;  %v1955_v3 = vor.u32 %v2249_v63, %v1954_v61  ;;  %v1914_v4 = vld [vmem:[#allocation5 + $0x10] sm:$0xf] }
 0x1e5   :  { %1382 = vmatpush.bf16.msrb.mxu2 %v1967_v17  ;;  %v2115_v7 = vor.u32 %v2289_v1, %v2114_v0  ;;  %v2245_v0 = vld [vmem:[#allocation5 + $0x5c] sm:$0xf] }
 0x1e6   :  { %1407 = vmatpush.bf16.msrb.mxu0 %v2007_v9  ;;  %1396 = vmatpush.bf16.msrb.mxu3 %v1939_v34  ;;  %v2074_v9 = vld [vmem:[#allocation5 + $0x150] sm:$0xf]  ;;  %v1956_v1 = vld [vmem:[#allocation5 + $0x78] sm:$0xf0] }
 0x1e7   :  { %1370 = vmatpush.bf16.msrb.mxu1 %v1931_v28  ;;  %v2075_v12 = vor.u32 %v2280_v10, %v2074_v9  ;;  %v2047_v28 = vor.u32 %v2268_v23, %v2044_v25  ;;  %v2264_v34 = vld [vmem:[#allocation5 + $0xec] sm:$0xf0]  ;;  %v1922_v9 = vld [vmem:[#allocation5 + $0x18] sm:$0xf] }
 0x1e8   :  { %v2241_v10 = vld [vmem:[#allocation5 + $0x34] sm:$0xf0] }
 0x1e9   :  { %1383 = vmatpush.bf16.msrb.mxu2 %v1935_v33  ;;  %v2010_v33 = vld [vmem:[#allocation5 + $0xd0] sm:$0xf]  ;;  %v1026_v23 = vld [vmem:[%s2599_s12] sm:$0xff] }
 0x1ea   :  { %1408 = vmatpush.bf16.msrb.mxu0 %v1975_v22  ;;  %1397 = vmatpush.bf16.msrb.mxu3 %v1907_v51  ;;  %v2272_v22 = vld [vmem:[#allocation5 + $0x12c] sm:$0xf0]  ;;  %v2011_v36 = vor.u32 %v2264_v34, %v2010_v33  ;;  %v1986_v51 = vld [vmem:[#allocation5 + $0x98] sm:$0xf]  ;;  %v1028_v26 = vperm.slane %v1026_v23, 0  ;;  %v1029_v27 = vperm.slane %v1026_v23, 1 }
 0x1eb   :  { %1371 = vmatpush.bf16.msrb.mxu1 %v1899_v47  ;;  %v2043_v24 = vor.u32 %v2272_v22, %v2042_v21  ;;  %v2252_v47 = vld [vmem:[#allocation5 + $0x94] sm:$0xf]  ;;  %v1032_v43 = vperm.slane %v1026_v23, 4 }
 0x1ed   :  { %1384 = vmatpush.bf16.msrb.mxu2 %v1903_v50  ;;  %v1983_v50 = vor.u32 %v2252_v47, %v1980_v48 }
 0x1ee   :  { %1409 = vmatpush.bf16.msrb.mxu0 %v1943_v39  ;;  %v2265_v39 = vld [vmem:[#allocation5 + $0xf4] sm:$0xf0] }
 0x1ef   :  { %1416 = vmatpush.bf16.msra.mxu1 %v2139_v56  ;;  %v1946_v56 = vld [vmem:[#allocation5 + $0x50] sm:$0xf] }
 0x1f1   :  { %1429 = vmatpush.bf16.msra.mxu2 %v2143_v57  ;;  %v2248_v57 = vld [vmem:[#allocation5 + $0x6c] sm:$0xf0] }
 0x1f2   :  { %1410 = vmatpush.bf16.msrb.mxu0 %v1911_v55  ;;  %v1988_v55 = vld [vmem:[#allocation5 + $0xb8] sm:$0xf0] }
 0x1f3   :  { %1417 = vmatpush.bf16.msra.mxu1 %v2107_v5  ;;  %v2240_v5 = vld [vmem:[#allocation5 + $0x2c] sm:$0xf0] }
 0x1f4   :  { %v1915_v13 = vor.u32 %v2240_v5, %v1914_v4 }
 0x1f5   :  { %1430 = vmatpush.bf16.msra.mxu2 %v2111_v6  ;;  %v2236_v6 = vld [vmem:[#allocation5 + $0x14] sm:$0xf] }
 0x1f6   :  { %1455 = vmatpush.bf16.msra.mxu0 %v2151_v62  ;;  %v1947_v62 = vor.u32 %v2248_v57, %v1946_v56  ;;  %v1034_v57 = vperm.slane %v1026_v23, 6 }
 0x1f7   :  { %1418 = vmatpush.bf16.msra.mxu1 %v2075_v12  ;;  %v1924_v12 = vld [vmem:[#allocation5 + $0x38] sm:$0xf0] }
 0x1f9   :  { %1431 = vmatpush.bf16.msra.mxu2 %v2079_v16  ;;  %v1927_v16 = vor.u32 %v2237_v11, %v1924_v12 }
 0x1fa   :  { %1456 = vmatpush.bf16.msra.mxu0 %v2119_v8  ;;  %v1916_v8 = vld [vmem:[#allocation5 + $0x30] sm:$0xf0] }
 0x1fb   :  { %1419 = vmatpush.bf16.msra.mxu1 %v2043_v24 }
 0x1fd   :  { %1432 = vmatpush.bf16.msra.mxu2 %v2047_v28  ;;  %v1031_v28 = vperm.slane %v1026_v23, 3 }
 0x1fe   :  { %1457 = vmatpush.bf16.msra.mxu0 %v2087_v20 }
 0x1ff   :  { %1420 = vmatpush.bf16.msra.mxu1 %v2011_v36 }
 0x201   :  { %1433 = vmatpush.bf16.msra.mxu2 %v2015_v40 }
 0x205   :  { %1434 = vmatpush.bf16.msra.mxu2 %v1983_v50 }
 0x265   :  { %v902_v32 = vpop.f32.mrf.mxu2 }
 0x266   :  { %v903_v38 = vadd.f32 %v2308_v15, %v902_v32  ;;  %v2281_v15 = vld [vmem:[#allocation5 + $0x174] sm:$0xf0]  ;;  %v2055_v32 = vor.u32 %v2269_v30, %v2052_v31 }
 0x267   :  { %v2083_v17 = vor.u32 %v2281_v15, %v2082_v14  ;;  %v1919_v14 = vor.u32 %v2236_v6, %v1916_v8  ;;  %v1923_v15 = vor.u32 %v2241_v10, %v1922_v9 }
 0x268   :  { %v906_v46 = vmax.f32 %v903_v38, 0.0  ;;  %1458 = vmatpush.bf16.msra.mxu0 %v2055_v32  ;;  %v2018_v38 = vld [vmem:[#allocation5 + $0xd8] sm:$0xf] }
 0x269   :  { %v2019_v41 = vor.u32 %v2265_v39, %v2018_v38 }
 0x26a   :  { %v907_v54 = vpack.c.bf16 %v906_v46, %v906_v46  ;;  %v2256_v46 = vld [vmem:[#allocation5 + $0xac] sm:$0xf0] }
 0x26b   :  { %v1979_v49 = vor.u32 %v2256_v46, %v1978_v44  ;;  %v1035_v46 = vperm.slane %v1026_v23, 7 }
 0x26c   :  { %1895 = vmatmul.msk.bf16.vlgmr.msra.gmra.mxu3 %vm850_vm0, %v907_v54  ;;  %1459 = vmatpush.bf16.msra.mxu0 %v2023_v45  ;;  %v1987_v54 = vor.u32 %v2257_v52, %v1986_v51 }
 0x26d   :  { %v904_v2 = vpop.f32.mrf.mxu2  ;;  %1442 = vmatpush.bf16.msra.mxu3 %v2147_v58  ;;  %v1991_v58 = vor.u32 %v2253_v53, %v1988_v55  ;;  %1421 = vmatpush.bf16.msra.mxu1 %v1979_v49  ;;  %v1033_v55 = vperm.slane %v1026_v23, 5 }
 0x26e   :  { %v1951_v2 = vor.u32 %v2244_v59, %v1948_v60 }
 0x270   :  { %1460 = vmatpush.bf16.msra.mxu0 %v1991_v58  ;;  %1435 = vmatpush.bf16.msra.mxu2 %v1951_v2 }
 0x271   :  { %1443 = vmatpush.bf16.msra.mxu3 %v2115_v7  ;;  %v1959_v7 = vor.u32 %v2245_v0, %v1956_v1  ;;  %1422 = vmatpush.bf16.msra.mxu1 %v1947_v62 }
 0x274   :  { %1461 = vmatpush.bf16.msra.mxu0 %v1959_v7  ;;  %1436 = vmatpush.bf16.msra.mxu2 %v1919_v14 }
 0x275   :  { %1444 = vmatpush.bf16.msra.mxu3 %v2083_v17  ;;  %1423 = vmatpush.bf16.msra.mxu1 %v1915_v13  ;;  %v2309_v17 = vld [vmem:[%s2597_s10] ss:$0 sm:$0xff]  ;;  %s2426_s10 = smov [#allocation7]  }
 0x276   :  { %s1552_s12 = sshll.u32 %s2426_s10, 4  ;;  %s1553_s12 = int_to_ptr.vmem [resolvable:$true] %s1552_s12 }
 0x278   :  { %1462 = vmatpush.bf16.msra.mxu0 %v1927_v16 }
 0x279   :  { %1445 = vmatpush.bf16.msra.mxu3 %v2051_v29  ;;  %v1030_v29 = vperm.slane %v1026_v23, 2 }
 0x27d   :  { %1446 = vmatpush.bf16.msra.mxu3 %v2019_v41 }
 0x281   :  { %1447 = vmatpush.bf16.msra.mxu3 %v1987_v54 }
 0x285   :  { %1448 = vmatpush.bf16.msra.mxu3 %v1955_v3 }
 0x289   :  { %1449 = vmatpush.bf16.msra.mxu3 %v1923_v15 }
 0x2ef   :  { %v956_v18 = vpop.f32.mrf.mxu3 }
 0x2f0   :  { %v957_v19 = vadd.f32 %v2309_v17, %v956_v18 }
 0x2f2   :  { %v960_v20 = vmax.f32 %v957_v19, 0.0 }
 0x2f4   :  { %v961_v21 = vpack.c.bf16 %v960_v20, %v960_v20 }
 0x2f6   :  { %1372 = vmatmul.bf16.vlgmr.msrb.gmra.mxu1 %v961_v21  ;;  %1385 = vmatmul.bf16.vlgmr.msrb.gmra.mxu2 %v961_v21 }
 0x2f7   :  { %1398 = vmatmul.bf16.vlgmr.msrb.gmra.mxu3 %v961_v21  ;;  %1411 = vmatmul.bf16.vlgmr.msrb.gmra.mxu0 %v961_v21  ;;  %v958_v22 = vpop.f32.mrf.mxu3 }
 0x306   :  { %1424 = vmatmul.bf16.vlgmr.msra.gmra.mxu1 %v961_v21  ;;  %1437 = vmatmul.bf16.vlgmr.msra.gmra.mxu2 %v961_v21 }
 0x307   :  { %1450 = vmatmul.bf16.vlgmr.msra.gmra.mxu3 %v961_v21  ;;  %1463 = vmatmul.bf16.vlgmr.msra.gmra.mxu0 %v961_v21 }
 0x373   :  { %v1373_v24 = vpop.f32.mrf.mxu1 }
 0x374   :  { %v1412_v25 = vpop.f32.mrf.mxu0  ;;  %v1374_v31 = vadd.f32 %v1373_v24, %v1028_v26 }
 0x375   :  { %v1413_v34 = vadd.f32 %v1412_v25, %v1031_v28 }
 0x376   :  { %v1468_v40 = vsub.f32 0.0, %v1374_v31 }
 0x377   :  { %v1471_v42 = vsub.f32 0.0, %v1413_v34 }
 0x378   :  { %v1476_v47 = vmul.f32 1.442695, %v1468_v40 }
 0x379   :  { %v1386_v30 = vpop.f32.mrf.mxu2  ;;  %v1482_v49 = vmul.f32 1.442695, %v1471_v42 }
 0x37a   :  { %v1387_v32 = vadd.f32 %v1386_v30, %v1029_v27  ;;  %v1399_v33 = vpop.f32.mrf.mxu3 }
 0x37b   :  { %v1400_v35 = vadd.f32 %v1399_v33, %v1030_v29  ;;  %v1375_v36 = vpop.f32.mrf.mxu1 }
 0x37c   :  { %v1469_v37 = vsub.f32 0.0, %v1387_v32  ;;  %v1414_v38 = vpop.f32.mrf.mxu0 }
 0x37d   :  { %v1470_v39 = vsub.f32 0.0, %v1400_v35 }
 0x37e   :  { %v1478_v41 = vmul.f32 1.442695, %v1469_v37 }
 0x37f   :  { %v1480_v44 = vmul.f32 1.442695, %v1470_v39 }
 0x380   :  { %2310 = vpow2.f32 %v1478_v41 }
 0x381   :  { %v1388_v45 = vpop.f32.mrf.mxu2  ;;  %2312 = vpow2.f32 %v1480_v44 }
 0x382   :  { %v1401_v48 = vpop.f32.mrf.mxu3  ;;  %2314 = vpow2.f32 %v1476_v47 }
 0x383   :  { %v1425_v50 = vpop.f32.mrf.mxu1  ;;  %2316 = vpow2.f32 %v1482_v49 }
 0x384   :  { %v1426_v51 = vadd.f32 %v1425_v50, %v1032_v43  ;;  %v1464_v52 = vpop.f32.mrf.mxu0 }
 0x385   :  { %v1465_v53 = vadd.f32 %v1464_v52, %v1035_v46 }
 0x386   :  { %v1472_v54 = vsub.f32 0.0, %v1426_v51  ;;  %v2311_v58 = vpop.eup %2310 }
 0x387   :  { %v1475_v56 = vsub.f32 0.0, %v1465_v53  ;;  %v2313_v0 = vpop.eup %2312  ;;  %v1493_v1 = vadd.f32 1.0, %v2311_v58 }
 0x388   :  { %v1484_v59 = vmul.f32 1.442695, %v1472_v54  ;;  %v2315_v4 = vpop.eup %2314  ;;  %v1494_v9 = vadd.f32 1.0, %v2313_v0 }
 0x389   :  { %v1490_v60 = vmul.f32 1.442695, %v1475_v56  ;;  %v1438_v61 = vpop.f32.mrf.mxu2  ;;  %v2317_v7 = vpop.eup %2316  ;;  %v1492_v11 = vadd.f32 1.0, %v2315_v4 }
 0x38a   :  { %v1439_v62 = vadd.f32 %v1438_v61, %v1033_v55  ;;  %v1451_v63 = vpop.f32.mrf.mxu3  ;;  %2318 = vpow2.f32 %v1484_v59  ;;  %v1495_v13 = vadd.f32 1.0, %v2317_v7 }
 0x38b   :  { %v1452_v2 = vadd.f32 %v1451_v63, %v1034_v57  ;;  %v1427_v3 = vpop.f32.mrf.mxu1  ;;  %2320 = vpow2.f32 %v1490_v60 }
 0x38c   :  { %v1473_v5 = vsub.f32 0.0, %v1439_v62  ;;  %v1466_v6 = vpop.f32.mrf.mxu0  ;;  %2322 = vrcp.f32 %v1493_v1 }
 0x38d   :  { %v1474_v8 = vsub.f32 0.0, %v1452_v2 }
 0x38e   :  { %v1486_v10 = vmul.f32 1.442695, %v1473_v5 }
 0x38f   :  { %v1488_v12 = vmul.f32 1.442695, %v1474_v8 }
 0x390   :  { %2324 = vpow2.f32 %v1486_v10  ;;  %v2319_v14 = vpop.eup %2318 }
 0x391   :  { %2326 = vpow2.f32 %v1488_v12  ;;  %v1440_v15 = vpop.f32.mrf.mxu2  ;;  %v2321_v16 = vpop.eup %2320  ;;  %v1496_v18 = vadd.f32 1.0, %v2319_v14 }
 0x392   :  { %2328 = vrcp.f32 %v1494_v9  ;;  %v1453_v17 = vpop.f32.mrf.mxu3  ;;  %v1499_v19 = vadd.f32 1.0, %v2321_v16  ;;  %v2323_v20 = vpop.eup %2322 }
 0x393   :  { %2330 = vrcp.f32 %v1492_v11 }
 0x394   :  { %2332 = vrcp.f32 %v1495_v13 }
 0x395   :  { %2334 = vrcp.f32 %v1496_v18 }
 0x396   :  { %v2325_v21 = vpop.eup %2324  ;;  %2336 = vrcp.f32 %v1499_v19 }
 0x397   :  { %v2327_v22 = vpop.eup %2326  ;;  %v1497_v23 = vadd.f32 1.0, %v2325_v21 }
 0x398   :  { %v2329_v24 = vpop.eup %2328  ;;  %v1498_v25 = vadd.f32 1.0, %v2327_v22 }
 0x399   :  { %v2331_v26 = vpop.eup %2330  ;;  %2338 = vrcp.f32 %v1497_v23 }
 0x39a   :  { %v2333_v27 = vpop.eup %2332  ;;  %2340 = vrcp.f32 %v1498_v25  ;;  %v1508_v28 = vpack.c.bf16 %v2323_v20, %v2331_v26 }
 0x39b   :  { %v1509_v29 = vpack.c.bf16 %v2333_v27, %v2329_v24  ;;  %v2335_v30 = vpop.eup %2334 }
 0x39c   :  { %v2337_v31 = vpop.eup %2336  ;;  %v1516_v33 = vrot.slane %v1508_v28, 3 }
 0x39d   :  { %v1517_v34 = vrot.slane %v1509_v29, 6  ;;  %v1518_v35 = vrot.slane %v1509_v29, 1 }
 0x39e   :  { %v1526_v43 = vsel %vm1523_vm2, %v1508_v28, %v1516_v33 }
 0x39f   :  { %v2339_v32 = vpop.eup %2338  ;;  %v1530_v44 = vsel %vm1527_vm3, %v1517_v34, %v1518_v35 }
 0x3a0   :  { %v2341_v36 = vpop.eup %2340  ;;  %v1510_v37 = vpack.c.bf16 %v2339_v32, %v2335_v30  ;;  %v1532_v47 = vsel %vm1531_vm4, %v1526_v43, %v1530_v44 }
 0x3a1   :  { %v1511_v38 = vpack.c.bf16 %v2337_v31, %v2341_v36 }
 0x3a2   :  { %v1519_v39 = vrot.slane %v1510_v37, 4  ;;  %v1520_v40 = vrot.slane %v1510_v37, 7 }
 0x3a3   :  { %v1521_v41 = vrot.slane %v1511_v38, 2  ;;  %v1522_v42 = vrot.slane %v1511_v38, 5 }
 0x3a4   :  { %v1536_v45 = vsel %vm1533_vm5, %v1519_v39, %v1520_v40 }
 0x3a5   :  { %v1540_v46 = vsel %vm1537_vm6, %v1521_v41, %v1522_v42 }
 0x3a6   :  { %v1542_v48 = vsel %vm1541_vm7, %v1536_v45, %v1540_v46 }
 0x3a7   :  { %v1544_v49 = vsel %vm1543_vm8, %v1532_v47, %v1542_v48 }
 0x3a8   :  { %1546 = vst [vmem:[#allocation7] sm:$0xff] %v1544_v49 }
 0x3a9   :  { %1557 = dma.vmem_to_hbm [thread:$0]  %s1553_s12, 128, %s1555_s3, [#allocation4]  }
 0x3aa   :  { %2418 = dma.done.wait [#allocation4], 128  }
 0x3ab   :  { %2419 = vsyncadd [#allocation4], 4294967168 }
 0x3ac   :  { %1562 = vsyncpa [#allocation3], 1 }
 0x3ad   :  { %1563 = vsyncpa [#allocation6], 1 }
 0x3ae   :  { %1564 = vsyncpa [#allocation4], 1 }

</bundles_post_ra>
